<compile_context>
chip_gen: v6e
topology: v6e:2x2x1
jax: 0.10.0
libtpu: 0.0.40
codegen_flags: <defaults>
</compile_context>

<pallas_src>
import functools
import math

import jax
import jax.numpy as jnp
from jax.experimental import pallas as pl
from jax.experimental.pallas import tpu as pltpu


# ---------------------------------------------------------------------------
# Kernel
# ---------------------------------------------------------------------------
def _attn_group_kernel(x_ref, wq_ref, wk_ref, wv_ref,
                       bq_ref, bk_ref, bv_ref, mask_ref,
                       out_ref, k_scr, v_scr,
                       *, head_dim, heads_per_group, q_tile):
    """One (head-group, batch, query-tile) step.

    x_ref   : (1, S, H)        input dtype (cast to bf16 here)
    w*_ref  : (1, H, gw)       bf16  (per-head-group slice of W^T)
    b*_ref  : (1, 1, gw)       f32
    mask_ref: (1, 1, S)        f32 additive mask
    out_ref : (1, q_tile, gw)  bf16  (columns gi*gw:(gi+1)*gw of [B, S, H])
    k_scr   : (S, gw)          bf16 scratch, persistent across query tiles
    v_scr   : (S, gw)          bf16 scratch, persistent across query tiles
    """
    qt = pl.program_id(2)
    d = head_dim
    scale = 1.0 / math.sqrt(d)

    # K/V projections for the whole head group: once per (group, batch), kept
    # resident in VMEM scratch for every query tile of this (group, batch).
    @pl.when(qt == 0)
    def _():
        xf = x_ref[0].astype(jnp.bfloat16)                               # [S, H]
        k = jnp.dot(xf, wk_ref[0], preferred_element_type=jnp.float32) + bk_ref[0]
        v = jnp.dot(xf, wv_ref[0], preferred_element_type=jnp.float32) + bv_ref[0]
        k_scr[...] = k.astype(jnp.bfloat16)
        v_scr[...] = v.astype(jnp.bfloat16)

    # Query projection for this query tile only; fold 1/sqrt(d) into q here
    # (q_tile*gw multiplies instead of heads*q_tile*S inside the head loop).
    q_start = pl.multiple_of(qt * q_tile, q_tile)
    xq = x_ref[0, pl.ds(q_start, q_tile), :].astype(jnp.bfloat16)        # [tq, H]
    q = jnp.dot(xq, wq_ref[0], preferred_element_type=jnp.float32) + bq_ref[0]
    qb = (q * scale).astype(jnp.bfloat16)                                # [tq, gw]

    mask = mask_ref[0]                                                   # [1, S] f32

    for h in range(heads_per_group):          # static unroll over heads in group
        hs, he = h * d, (h + 1) * d
        qh = qb[:, hs:he]                                                # [tq, d]
        kh = k_scr[:, hs:he]                                             # [S, d]
        vh = v_scr[:, hs:he]                                             # [S, d]

        # q @ k^T contracting directly on d (no materialized k.T).
        scores = jax.lax.dot_general(
            qh, kh, dimension_numbers=(((1,), (1,)), ((), ())),
            preferred_element_type=jnp.float32)                          # [tq, S]
        scores = scores + mask

        # Softmax with deferred normalization: normalize the [tq, d] context
        # instead of the [tq, S] probabilities.  All stats stay in f32.
        m = jnp.max(scores, axis=-1, keepdims=True)
        e = jnp.exp(scores - m)
        denom = jnp.sum(e, axis=-1, keepdims=True)
        # TODO(synk): attention-probs dropout would be applied to `e` here.
        ctx = jnp.dot(e.astype(jnp.bfloat16), vh,
                      preferred_element_type=jnp.float32)                # [tq, d]
        ctx = ctx * pl.reciprocal(denom, approx=True)

        # Per-head store straight into the lane-dense output block
        # (no concatenate, no second [tq, gw] assembly buffer).
        out_ref[0, :, hs:he] = ctx.astype(out_ref.dtype)


# ---------------------------------------------------------------------------
# VMEM-aware planning
# ---------------------------------------------------------------------------
def _vmem_capacity_bytes():
    try:
        cap = getattr(pltpu.get_tpu_info(), "vmem_capacity_bytes", None)
        if cap:
            return int(cap)
    except Exception:
        pass
    return 64 << 20          # conservative fallback (v7x per-TC physical VMEM)


def _estimate_vmem_bytes(S, H, gw, q_tile):
    """Rough per-program VMEM footprint (pipelined blocks + scratch + temps)."""
    blocks = 2 * (S * H * 4            # x block (f32, double buffered)
                  + 3 * H * gw * 2     # Wq/Wk/Wv blocks (bf16)
                  + 3 * 8 * gw * 4     # biases (sublane padded)
                  + 8 * S * 4          # mask
                  + q_tile * gw * 2)   # output block (bf16)
    scratch = 2 * S * gw * 2           # k/v bf16 scratch
    temps = (q_tile * gw * 6           # q f32 + bf16 copy
             + 3 * q_tile * S * 4      # scores / exp f32 live values
             + q_tile * S * 2          # exp bf16
             + 2 * S * gw * 4)         # k/v f32 before the cast (qt == 0)
    return int(1.15 * (blocks + scratch + temps))


def _q_tile_candidates(S):
    cands = [S]
    for t in (2048, 1024, 512, 256, 128, 64, 32, 16, 8):
        if t < S and S % t == 0:
            cands.append(t)
    return cands                       # descending


def _choose_heads_per_group(num_heads, head_dim, hidden, seq_len, budget):
    """Largest head group whose width is 128-lane friendly and fits the budget."""
    legal = [g for g in range(num_heads, 0, -1)
             if num_heads % g == 0
             and (g * head_dim % 128 == 0 or g * head_dim == hidden)]
    qt_min = _q_tile_candidates(seq_len)[-1]
    for g in legal:                    # prefer the widest group (gw == H if possible)
        if _estimate_vmem_bytes(seq_len, hidden, g * head_dim, qt_min) <= budget:
            return g
    return legal[-1]                   # best effort (g == num_heads is always legal)


def _choose_q_tile(seq_len, hidden, gw, budget):
    for qt in _q_tile_candidates(seq_len):
        if _estimate_vmem_bytes(seq_len, hidden, gw, qt) <= budget:
            return qt
    return _q_tile_candidates(seq_len)[-1]


# ---------------------------------------------------------------------------
# One-time parameter packing (hoisted out of the per-call path)
# ---------------------------------------------------------------------------
def pack_bert_attention_params(params, num_attention_heads, max_seq_len=512):
    """Repack torch-Linear q/k/v weights into head-grouped bf16 [G, H, gw] blocks."""
    H = params["wq"].shape[0]
    nh = num_attention_heads
    if H % nh != 0:
        raise ValueError(f"hidden size {H} is not a multiple of num heads {nh}")
    d = H // nh
    budget = int(0.6 * _vmem_capacity_bytes())
    g = _choose_heads_per_group(nh, d, H, max_seq_len, budget)
    G = nh // g
    gw = g * d

    def pack_w(w):                     # torch Linear weight [out=H, in=H]; y = x @ w.T
        wt = jnp.asarray(w, jnp.float32).T.reshape(H, G, gw)
        return jnp.transpose(wt, (1, 0, 2)).astype(jnp.bfloat16)

    def pack_b(b):
        return jnp.asarray(b, jnp.float32).reshape(G, 1, gw)

    return {
        "wq": pack_w(params["wq"]), "wk": pack_w(params["wk"]), "wv": pack_w(params["wv"]),
        "bq": pack_b(params["bq"]), "bk": pack_b(params["bk"]), "bv": pack_b(params["bv"]),
        "num_heads": nh, "head_dim": d, "heads_per_group": g,
    }


# ---------------------------------------------------------------------------
# Forward wrapper
# ---------------------------------------------------------------------------
def bert_self_attention(hidden_states, attention_mask, packed,
                        q_tile=None, out_dtype=jnp.bfloat16):
    """hidden_states [B,S,H], attention_mask [B,1,1,S] additive, packed params."""
    # TODO(synk): history_states path (key/value over concatenated history) NYI.
    B, S, H = hidden_states.shape
    nh = packed["num_heads"]
    d = packed["head_dim"]
    g = packed["heads_per_group"]
    G = nh // g
    gw = g * d
    assert G * gw == H, "packed params inconsistent with hidden size"

    vmem_cap = _vmem_capacity_bytes()
    budget = int(0.6 * vmem_cap)
    if q_tile is None:
        q_tile = _choose_q_tile(S, H, gw, budget)
    assert S % q_tile == 0 and (q_tile % 8 == 0 or q_tile == S)
    QT = S // q_tile

    est = _estimate_vmem_bytes(S, H, gw, q_tile)
    vmem_limit = max(32 << 20, min(int(0.75 * vmem_cap), 100 << 20, 2 * est))

    mask = attention_mask.reshape(B, 1, S).astype(jnp.float32)

    # Advisory cost estimate for the XLA scheduler.
    flops = int(B * 3 * 2 * S * H * H + B * nh * 4 * S * S * d)
    transcendentals = int(B * nh * S * S)
    bytes_accessed = int(G * B * S * H * hidden_states.dtype.itemsize
                         + 3 * H * H * 2 + B * S * H * 2 + G * B * S * 4)

    kernel = functools.partial(_attn_group_kernel, head_dim=d,
                               heads_per_group=g, q_tile=q_tile)

    out = pl.pallas_call(
        kernel,
        out_shape=jax.ShapeDtypeStruct((B, S, H), out_dtype),
        grid_spec=pltpu.PrefetchScalarGridSpec(
            num_scalar_prefetch=0,
            grid=(G, B, QT),
            in_specs=[
                # hidden states: stay f32 in HBM, cast to bf16 in-kernel
                pl.BlockSpec((1, S, H), lambda gi, b, qt: (b, 0, 0)),
                # weight groups: index depends only on the LEADING grid axis, so
                # they stay VMEM-resident across batch / query-tile steps.
                pl.BlockSpec((1, H, gw), lambda gi, b, qt: (gi, 0, 0)),
                pl.BlockSpec((1, H, gw), lambda gi, b, qt: (gi, 0, 0)),
                pl.BlockSpec((1, H, gw), lambda gi, b, qt: (gi, 0, 0)),
                pl.BlockSpec((1, 1, gw), lambda gi, b, qt: (gi, 0, 0)),
                pl.BlockSpec((1, 1, gw), lambda gi, b, qt: (gi, 0, 0)),
                pl.BlockSpec((1, 1, gw), lambda gi, b, qt: (gi, 0, 0)),
                # additive attention mask
                pl.BlockSpec((1, 1, S), lambda gi, b, qt: (b, 0, 0)),
            ],
            # Lane-dense bf16 output written directly in the final [B,S,H] layout.
            out_specs=pl.BlockSpec((1, q_tile, gw), lambda gi, b, qt: (b, qt, gi)),
            scratch_shapes=[
                pltpu.VMEM((S, gw), jnp.bfloat16),   # K for current (group, batch)
                pltpu.VMEM((S, gw), jnp.bfloat16),   # V for current (group, batch)
            ],
        ),
        compiler_params=pltpu.CompilerParams(
            dimension_semantics=("parallel", "parallel", "arbitrary"),
            vmem_limit_bytes=vmem_limit),
        cost_estimate=pl.CostEstimate(flops=flops,
                                      transcendentals=transcendentals,
                                      bytes_accessed=bytes_accessed),
    )(hidden_states, packed["wq"], packed["wk"], packed["wv"],
      packed["bq"], packed["bk"], packed["bv"], mask)
    return out                                  # [B, S, H] bf16; no post-kernel transpose


# ---------------------------------------------------------------------------
# Reference + self-test
# ---------------------------------------------------------------------------
def _reference(hidden_states, attention_mask, params, nh):
    B, S, H = hidden_states.shape
    d = H // nh
    q = hidden_states @ params["wq"].T + params["bq"]
    k = hidden_states @ params["wk"].T + params["bk"]
    v = hidden_states @ params["wv"].T + params["bv"]

    def t(x):
        return jnp.transpose(x.reshape(B, S, nh, d), (0, 2, 1, 3))
    q, k, v = t(q), t(k), t(v)
    s = jnp.einsum("bhqd,bhkd->bhqk", q, k) / math.sqrt(d)
    s = s + attention_mask                       # [B,1,1,S] broadcast
    p = jax.nn.softmax(s, axis=-1)
    ctx = jnp.einsum("bhqk,bhkd->bhqd", p, v)
    return jnp.transpose(ctx, (0, 2, 1, 3)).reshape(B, S, H)


def _run_case(key, B, S, H, NH, w_scale, q_tile, atol):
    ks = jax.random.split(key, 7)
    hidden_states = jax.random.normal(ks[0], (B, S, H), dtype=jnp.float32)
    # additive mask: 0 for attended positions, -10000 for the masked-out tail
    lengths = jnp.array([S, max(1, S - 3)])[:B]
    valid = (jnp.arange(S)[None, :] < lengths[:, None]).astype(jnp.float32)
    attention_mask = ((1.0 - valid) * -10000.0).reshape(B, 1, 1, S)

    params = {
        "wq": jax.random.normal(ks[1], (H, H), dtype=jnp.float32) * w_scale,
        "wk": jax.random.normal(ks[2], (H, H), dtype=jnp.float32) * w_scale,
        "wv": jax.random.normal(ks[3], (H, H), dtype=jnp.float32) * w_scale,
        "bq": jax.random.normal(ks[4], (H,), dtype=jnp.float32) * w_scale,
        "bk": jax.random.normal(ks[5], (H,), dtype=jnp.float32) * w_scale,
        "bv": jax.random.normal(ks[6], (H,), dtype=jnp.float32) * w_scale,
    }

    packed = pack_bert_attention_params(params, NH, max_seq_len=S)
    out = bert_self_attention(hidden_states, attention_mask, packed, q_tile=q_tile)
    out = jax.block_until_ready(out)

    ref = _reference(hidden_states, attention_mask, params, NH)
    assert out.shape == (B, S, H)
    # bf16 MXU operands + bf16 output (f32 accumulation) => loose tolerance.
    err = float(jnp.max(jnp.abs(out.astype(jnp.float32) - ref)))
    assert err < atol, f"max |err| {err} >= {atol} at (B={B},S={S},H={H},NH={NH})"


if __name__ == "__main__":
    key = jax.random.PRNGKey(0)
    k1, k2 = jax.random.split(key)
    # Small sanity case (full-array blocks, single query tile).
    _run_case(k1, B=2, S=8, H=32, NH=4, w_scale=0.05, q_tile=None, atol=2e-2)
    # Slightly larger case: exercises real (8,128) tiling, d=64 head slicing
    # inside a 256-lane group block, and the multi-query-tile (pl.when) path.
    _run_case(k2, B=2, S=128, H=256, NH=4, w_scale=0.02, q_tile=64, atol=3e-2)
    print("KERNEL_OK")
</pallas_src>

<mosaic_0001>
module attributes {stable_mosaic.version = 11 : i64} {
  func.func @_attn_group_kernel(%arg0: i32, %arg1: i32, %arg2: i32, %arg3: memref<1x8x32xf32, #tpu.memory_space<vmem>>, %arg4: memref<1x32x32xbf16, #tpu.memory_space<vmem>>, %arg5: memref<1x32x32xbf16, #tpu.memory_space<vmem>>, %arg6: memref<1x32x32xbf16, #tpu.memory_space<vmem>>, %arg7: memref<1x1x32xf32, #tpu.memory_space<vmem>>, %arg8: memref<1x1x32xf32, #tpu.memory_space<vmem>>, %arg9: memref<1x1x32xf32, #tpu.memory_space<vmem>>, %arg10: memref<1x1x8xf32, #tpu.memory_space<vmem>>, %arg11: memref<1x8x32xbf16, #tpu.memory_space<vmem>>, %arg12: memref<8x32xbf16, #tpu.memory_space<vmem>>, %arg13: memref<8x32xbf16, #tpu.memory_space<vmem>>) attributes {dimension_semantics = [#tpu.dimension_semantics<parallel>, #tpu.dimension_semantics<parallel>, #tpu.dimension_semantics<arbitrary>], iteration_bounds = array<i64: 1, 2, 1>, scalar_prefetch = 0 : i64, scratch_operands = 2 : i64, tpu.core_type = #tpu.core_type<tc>, window_params = [{transform_indices = @transform_0, window_bounds = array<i64: 1, 8, 32>}, {transform_indices = @transform_1, window_bounds = array<i64: 1, 32, 32>}, {transform_indices = @transform_2, window_bounds = array<i64: 1, 32, 32>}, {transform_indices = @transform_3, window_bounds = array<i64: 1, 32, 32>}, {transform_indices = @transform_4, window_bounds = array<i64: 1, 1, 32>}, {transform_indices = @transform_5, window_bounds = array<i64: 1, 1, 32>}, {transform_indices = @transform_6, window_bounds = array<i64: 1, 1, 32>}, {transform_indices = @transform_7, window_bounds = array<i64: 1, 1, 8>}, {transform_indices = @transform_8, window_bounds = array<i64: 1, 8, 32>}]} {
    %c0_i32 = arith.constant 0 : i32
    %0 = arith.cmpi eq, %arg2, %c0_i32 : i32
    %1 = arith.extui %0 : i1 to i32
    %c0_i32_0 = arith.constant 0 : i32
    %2 = arith.cmpi ne, %1, %c0_i32_0 : i32
    scf.if %2 {
      %c0_53 = arith.constant 0 : index
      %c0_54 = arith.constant 0 : index
      %c0_55 = arith.constant 0 : index
      %109 = vector.load %arg3[%c0_53, %c0_54, %c0_55] : memref<1x8x32xf32, #tpu.memory_space<vmem>>, vector<1x8x32xf32>
      %110 = vector.shape_cast %109 : vector<1x8x32xf32> to vector<8x32xf32>
      %111 = arith.truncf %110 : vector<8x32xf32> to vector<8x32xbf16>
      %c0_56 = arith.constant 0 : index
      %c0_57 = arith.constant 0 : index
      %c0_58 = arith.constant 0 : index
      %112 = vector.load %arg5[%c0_56, %c0_57, %c0_58] : memref<1x32x32xbf16, #tpu.memory_space<vmem>>, vector<1x32x32xbf16>
      %113 = vector.shape_cast %112 : vector<1x32x32xbf16> to vector<32x32xbf16>
      %cst_59 = arith.constant dense<0.000000e+00> : vector<8x32xf32>
      %114 = tpu.matmul %111, %113, %cst_59 {dimension_numbers = #tpu.dot_dimension_numbers<[1], [0], [0], [1], [0, 0, 1, 1], [], []>} : vector<8x32xbf16>, vector<32x32xbf16>, vector<8x32xf32> -> vector<8x32xf32>
      %c0_60 = arith.constant 0 : index
      %c0_61 = arith.constant 0 : index
      %c0_62 = arith.constant 0 : index
      %115 = vector.load %arg8[%c0_60, %c0_61, %c0_62] : memref<1x1x32xf32, #tpu.memory_space<vmem>>, vector<1x1x32xf32>
      %116 = vector.shape_cast %115 : vector<1x1x32xf32> to vector<1x32xf32>
      %117 = vector.broadcast %116 : vector<1x32xf32> to vector<8x32xf32>
      %118 = arith.addf %114, %117 : vector<8x32xf32>
      %c0_63 = arith.constant 0 : index
      %c0_64 = arith.constant 0 : index
      %c0_65 = arith.constant 0 : index
      %119 = vector.load %arg6[%c0_63, %c0_64, %c0_65] : memref<1x32x32xbf16, #tpu.memory_space<vmem>>, vector<1x32x32xbf16>
      %120 = vector.shape_cast %119 : vector<1x32x32xbf16> to vector<32x32xbf16>
      %cst_66 = arith.constant dense<0.000000e+00> : vector<8x32xf32>
      %121 = tpu.matmul %111, %120, %cst_66 {dimension_numbers = #tpu.dot_dimension_numbers<[1], [0], [0], [1], [0, 0, 1, 1], [], []>} : vector<8x32xbf16>, vector<32x32xbf16>, vector<8x32xf32> -> vector<8x32xf32>
      %c0_67 = arith.constant 0 : index
      %c0_68 = arith.constant 0 : index
      %c0_69 = arith.constant 0 : index
      %122 = vector.load %arg9[%c0_67, %c0_68, %c0_69] : memref<1x1x32xf32, #tpu.memory_space<vmem>>, vector<1x1x32xf32>
      %123 = vector.shape_cast %122 : vector<1x1x32xf32> to vector<1x32xf32>
      %124 = vector.broadcast %123 : vector<1x32xf32> to vector<8x32xf32>
      %125 = arith.addf %121, %124 : vector<8x32xf32>
      %126 = arith.truncf %118 : vector<8x32xf32> to vector<8x32xbf16>
      %c0_70 = arith.constant 0 : index
      %c0_71 = arith.constant 0 : index
      %127 = vector.load %arg12[%c0_70, %c0_71] : memref<8x32xbf16, #tpu.memory_space<vmem>>, vector<8x32xbf16>
      tpu.vector_store %arg12[%c0_70, %c0_71], %126 {strides = array<i32>} : memref<8x32xbf16, #tpu.memory_space<vmem>>, vector<8x32xbf16>,
      %128 = arith.truncf %125 : vector<8x32xf32> to vector<8x32xbf16>
      %c0_72 = arith.constant 0 : index
      %c0_73 = arith.constant 0 : index
      %129 = vector.load %arg13[%c0_72, %c0_73] : memref<8x32xbf16, #tpu.memory_space<vmem>>, vector<8x32xbf16>
      tpu.vector_store %arg13[%c0_72, %c0_73], %128 {strides = array<i32>} : memref<8x32xbf16, #tpu.memory_space<vmem>>, vector<8x32xbf16>,
    } else {
    }
    %c8_i32 = arith.constant 8 : i32
    %3 = arith.muli %arg2, %c8_i32 : i32
    %4 = tpu.assume_multiple %3, 8 : i32
    %c0 = arith.constant 0 : index
    %5 = arith.index_cast %4 : i32 to index
    %c0_1 = arith.constant 0 : index
    %6 = vector.load %arg3[%c0, %5, %c0_1] : memref<1x8x32xf32, #tpu.memory_space<vmem>>, vector<1x8x32xf32>
    %7 = vector.shape_cast %6 : vector<1x8x32xf32> to vector<8x32xf32>
    %8 = arith.truncf %7 : vector<8x32xf32> to vector<8x32xbf16>
    %c0_2 = arith.constant 0 : index
    %c0_3 = arith.constant 0 : index
    %c0_4 = arith.constant 0 : index
    %9 = vector.load %arg4[%c0_2, %c0_3, %c0_4] : memref<1x32x32xbf16, #tpu.memory_space<vmem>>, vector<1x32x32xbf16>
    %10 = vector.shape_cast %9 : vector<1x32x32xbf16> to vector<32x32xbf16>
    %cst = arith.constant dense<0.000000e+00> : vector<8x32xf32>
    %11 = tpu.matmul %8, %10, %cst {dimension_numbers = #tpu.dot_dimension_numbers<[1], [0], [0], [1], [0, 0, 1, 1], [], []>} : vector<8x32xbf16>, vector<32x32xbf16>, vector<8x32xf32> -> vector<8x32xf32>
    %c0_5 = arith.constant 0 : index
    %c0_6 = arith.constant 0 : index
    %c0_7 = arith.constant 0 : index
    %12 = vector.load %arg7[%c0_5, %c0_6, %c0_7] : memref<1x1x32xf32, #tpu.memory_space<vmem>>, vector<1x1x32xf32>
    %13 = vector.shape_cast %12 : vector<1x1x32xf32> to vector<1x32xf32>
    %14 = vector.broadcast %13 : vector<1x32xf32> to vector<8x32xf32>
    %15 = arith.addf %11, %14 : vector<8x32xf32>
    %cst_8 = arith.constant 0.353553385 : f32
    %16 = vector.broadcast %cst_8 : f32 to vector<8x32xf32>
    %17 = arith.mulf %15, %16 : vector<8x32xf32>
    %18 = arith.truncf %17 : vector<8x32xf32> to vector<8x32xbf16>
    %c0_9 = arith.constant 0 : index
    %c0_10 = arith.constant 0 : index
    %c0_11 = arith.constant 0 : index
    %19 = vector.load %arg10[%c0_9, %c0_10, %c0_11] : memref<1x1x8xf32, #tpu.memory_space<vmem>>, vector<1x1x8xf32>
    %20 = vector.shape_cast %19 : vector<1x1x8xf32> to vector<1x8xf32>
    %21 = vector.extract_strided_slice %18 {offsets = [0, 0], sizes = [8, 8], strides = [1, 1]} : vector<8x32xbf16> to vector<8x8xbf16>
    %c0_12 = arith.constant 0 : index
    %c0_13 = arith.constant 0 : index
    %22 = vector.load %arg12[%c0_12, %c0_13] : memref<8x32xbf16, #tpu.memory_space<vmem>>, vector<8x8xbf16>
    %c0_14 = arith.constant 0 : index
    %c0_15 = arith.constant 0 : index
    %23 = vector.load %arg13[%c0_14, %c0_15] : memref<8x32xbf16, #tpu.memory_space<vmem>>, vector<8x8xbf16>
    %cst_16 = arith.constant dense<0.000000e+00> : vector<8x8xf32>
    %24 = tpu.matmul %21, %22, %cst_16 {dimension_numbers = #tpu.dot_dimension_numbers<[1], [1], [0], [0], [0, 0, 1, 0], [], []>} : vector<8x8xbf16>, vector<8x8xbf16>, vector<8x8xf32> -> vector<8x8xf32>
    %25 = vector.broadcast %20 : vector<1x8xf32> to vector<8x8xf32>
    %26 = arith.addf %24, %25 : vector<8x8xf32>
    %cst_17 = arith.constant dense<0xFF800000> : vector<8xf32>
    %27 = vector.multi_reduction <maximumf>, %26, %cst_17 [1] : vector<8x8xf32> to vector<8xf32>
    %28 = vector.shape_cast %27 : vector<8xf32> to vector<8x1xf32>
    %29 = vector.broadcast %28 : vector<8x1xf32> to vector<8x8xf32>
    %30 = arith.subf %26, %29 : vector<8x8xf32>
    %31 = math.exp %30 : vector<8x8xf32>
    %cst_18 = arith.constant dense<0.000000e+00> : vector<8xf32>
    %32 = vector.multi_reduction <add>, %31, %cst_18 [1] : vector<8x8xf32> to vector<8xf32>
    %33 = vector.shape_cast %32 : vector<8xf32> to vector<8x1xf32>
    %34 = arith.truncf %31 : vector<8x8xf32> to vector<8x8xbf16>
    %cst_19 = arith.constant dense<0.000000e+00> : vector<8x8xf32>
    %35 = tpu.matmul %34, %23, %cst_19 {dimension_numbers = #tpu.dot_dimension_numbers<[1], [0], [0], [1], [0, 0, 1, 1], [], []>} : vector<8x8xbf16>, vector<8x8xbf16>, vector<8x8xf32> -> vector<8x8xf32>
    %36 = tpu.reciprocal %33 {approx = true} : vector<8x1xf32> -> vector<8x1xf32>
    %37 = vector.broadcast %36 : vector<8x1xf32> to vector<8x8xf32>
    %38 = arith.mulf %35, %37 : vector<8x8xf32>
    %39 = arith.truncf %38 : vector<8x8xf32> to vector<8x8xbf16>
    %c0_20 = arith.constant 0 : index
    %c0_21 = arith.constant 0 : index
    %c0_22 = arith.constant 0 : index
    %40 = vector.load %arg11[%c0_20, %c0_21, %c0_22] : memref<1x8x32xbf16, #tpu.memory_space<vmem>>, vector<1x8x8xbf16>
    %41 = vector.shape_cast %40 : vector<1x8x8xbf16> to vector<8x8xbf16>
    %42 = vector.shape_cast %39 : vector<8x8xbf16> to vector<1x8x8xbf16>
    tpu.vector_store %arg11[%c0_20, %c0_21, %c0_22], %42 {strides = array<i32>} : memref<1x8x32xbf16, #tpu.memory_space<vmem>>, vector<1x8x8xbf16>,
    %43 = vector.extract_strided_slice %18 {offsets = [0, 8], sizes = [8, 8], strides = [1, 1]} : vector<8x32xbf16> to vector<8x8xbf16>
    %c0_23 = arith.constant 0 : index
    %c8 = arith.constant 8 : index
    %44 = vector.load %arg12[%c0_23, %c8] : memref<8x32xbf16, #tpu.memory_space<vmem>>, vector<8x8xbf16>
    %c0_24 = arith.constant 0 : index
    %c8_25 = arith.constant 8 : index
    %45 = vector.load %arg13[%c0_24, %c8_25] : memref<8x32xbf16, #tpu.memory_space<vmem>>, vector<8x8xbf16>
    %cst_26 = arith.constant dense<0.000000e+00> : vector<8x8xf32>
    %46 = tpu.matmul %43, %44, %cst_26 {dimension_numbers = #tpu.dot_dimension_numbers<[1], [1], [0], [0], [0, 0, 1, 0], [], []>} : vector<8x8xbf16>, vector<8x8xbf16>, vector<8x8xf32> -> vector<8x8xf32>
    %47 = vector.broadcast %20 : vector<1x8xf32> to vector<8x8xf32>
    %48 = arith.addf %46, %47 : vector<8x8xf32>
    %cst_27 = arith.constant dense<0xFF800000> : vector<8xf32>
    %49 = vector.multi_reduction <maximumf>, %48, %cst_27 [1] : vector<8x8xf32> to vector<8xf32>
    %50 = vector.shape_cast %49 : vector<8xf32> to vector<8x1xf32>
    %51 = vector.broadcast %50 : vector<8x1xf32> to vector<8x8xf32>
    %52 = arith.subf %48, %51 : vector<8x8xf32>
    %53 = math.exp %52 : vector<8x8xf32>
    %cst_28 = arith.constant dense<0.000000e+00> : vector<8xf32>
    %54 = vector.multi_reduction <add>, %53, %cst_28 [1] : vector<8x8xf32> to vector<8xf32>
    %55 = vector.shape_cast %54 : vector<8xf32> to vector<8x1xf32>
    %56 = arith.truncf %53 : vector<8x8xf32> to vector<8x8xbf16>
    %cst_29 = arith.constant dense<0.000000e+00> : vector<8x8xf32>
    %57 = tpu.matmul %56, %45, %cst_29 {dimension_numbers = #tpu.dot_dimension_numbers<[1], [0], [0], [1], [0, 0, 1, 1], [], []>} : vector<8x8xbf16>, vector<8x8xbf16>, vector<8x8xf32> -> vector<8x8xf32>
    %58 = tpu.reciprocal %55 {approx = true} : vector<8x1xf32> -> vector<8x1xf32>
    %59 = vector.broadcast %58 : vector<8x1xf32> to vector<8x8xf32>
    %60 = arith.mulf %57, %59 : vector<8x8xf32>
    %61 = arith.truncf %60 : vector<8x8xf32> to vector<8x8xbf16>
    %c0_30 = arith.constant 0 : index
    %c0_31 = arith.constant 0 : index
    %c8_32 = arith.constant 8 : index
    %62 = vector.load %arg11[%c0_30, %c0_31, %c8_32] : memref<1x8x32xbf16, #tpu.memory_space<vmem>>, vector<1x8x8xbf16>
    %63 = vector.shape_cast %62 : vector<1x8x8xbf16> to vector<8x8xbf16>
    %64 = vector.shape_cast %61 : vector<8x8xbf16> to vector<1x8x8xbf16>
    tpu.vector_store %arg11[%c0_30, %c0_31, %c8_32], %64 {strides = array<i32>} : memref<1x8x32xbf16, #tpu.memory_space<vmem>>, vector<1x8x8xbf16>,
    %65 = vector.extract_strided_slice %18 {offsets = [0, 16], sizes = [8, 8], strides = [1, 1]} : vector<8x32xbf16> to vector<8x8xbf16>
    %c0_33 = arith.constant 0 : index
    %c16 = arith.constant 16 : index
    %66 = vector.load %arg12[%c0_33, %c16] : memref<8x32xbf16, #tpu.memory_space<vmem>>, vector<8x8xbf16>
    %c0_34 = arith.constant 0 : index
    %c16_35 = arith.constant 16 : index
    %67 = vector.load %arg13[%c0_34, %c16_35] : memref<8x32xbf16, #tpu.memory_space<vmem>>, vector<8x8xbf16>
    %cst_36 = arith.constant dense<0.000000e+00> : vector<8x8xf32>
    %68 = tpu.matmul %65, %66, %cst_36 {dimension_numbers = #tpu.dot_dimension_numbers<[1], [1], [0], [0], [0, 0, 1, 0], [], []>} : vector<8x8xbf16>, vector<8x8xbf16>, vector<8x8xf32> -> vector<8x8xf32>
    %69 = vector.broadcast %20 : vector<1x8xf32> to vector<8x8xf32>
    %70 = arith.addf %68, %69 : vector<8x8xf32>
    %cst_37 = arith.constant dense<0xFF800000> : vector<8xf32>
    %71 = vector.multi_reduction <maximumf>, %70, %cst_37 [1] : vector<8x8xf32> to vector<8xf32>
    %72 = vector.shape_cast %71 : vector<8xf32> to vector<8x1xf32>
    %73 = vector.broadcast %72 : vector<8x1xf32> to vector<8x8xf32>
    %74 = arith.subf %70, %73 : vector<8x8xf32>
    %75 = math.exp %74 : vector<8x8xf32>
    %cst_38 = arith.constant dense<0.000000e+00> : vector<8xf32>
    %76 = vector.multi_reduction <add>, %75, %cst_38 [1] : vector<8x8xf32> to vector<8xf32>
    %77 = vector.shape_cast %76 : vector<8xf32> to vector<8x1xf32>
    %78 = arith.truncf %75 : vector<8x8xf32> to vector<8x8xbf16>
    %cst_39 = arith.constant dense<0.000000e+00> : vector<8x8xf32>
    %79 = tpu.matmul %78, %67, %cst_39 {dimension_numbers = #tpu.dot_dimension_numbers<[1], [0], [0], [1], [0, 0, 1, 1], [], []>} : vector<8x8xbf16>, vector<8x8xbf16>, vector<8x8xf32> -> vector<8x8xf32>
    %80 = tpu.reciprocal %77 {approx = true} : vector<8x1xf32> -> vector<8x1xf32>
    %81 = vector.broadcast %80 : vector<8x1xf32> to vector<8x8xf32>
    %82 = arith.mulf %79, %81 : vector<8x8xf32>
    %83 = arith.truncf %82 : vector<8x8xf32> to vector<8x8xbf16>
    %c0_40 = arith.constant 0 : index
    %c0_41 = arith.constant 0 : index
    %c16_42 = arith.constant 16 : index
    %84 = vector.load %arg11[%c0_40, %c0_41, %c16_42] : memref<1x8x32xbf16, #tpu.memory_space<vmem>>, vector<1x8x8xbf16>
    %85 = vector.shape_cast %84 : vector<1x8x8xbf16> to vector<8x8xbf16>
    %86 = vector.shape_cast %83 : vector<8x8xbf16> to vector<1x8x8xbf16>
    tpu.vector_store %arg11[%c0_40, %c0_41, %c16_42], %86 {strides = array<i32>} : memref<1x8x32xbf16, #tpu.memory_space<vmem>>, vector<1x8x8xbf16>,
    %87 = vector.extract_strided_slice %18 {offsets = [0, 24], sizes = [8, 8], strides = [1, 1]} : vector<8x32xbf16> to vector<8x8xbf16>
    %c0_43 = arith.constant 0 : index
    %c24 = arith.constant 24 : index
    %88 = vector.load %arg12[%c0_43, %c24] : memref<8x32xbf16, #tpu.memory_space<vmem>>, vector<8x8xbf16>
    %c0_44 = arith.constant 0 : index
    %c24_45 = arith.constant 24 : index
    %89 = vector.load %arg13[%c0_44, %c24_45] : memref<8x32xbf16, #tpu.memory_space<vmem>>, vector<8x8xbf16>
    %cst_46 = arith.constant dense<0.000000e+00> : vector<8x8xf32>
    %90 = tpu.matmul %87, %88, %cst_46 {dimension_numbers = #tpu.dot_dimension_numbers<[1], [1], [0], [0], [0, 0, 1, 0], [], []>} : vector<8x8xbf16>, vector<8x8xbf16>, vector<8x8xf32> -> vector<8x8xf32>
    %91 = vector.broadcast %20 : vector<1x8xf32> to vector<8x8xf32>
    %92 = arith.addf %90, %91 : vector<8x8xf32>
    %cst_47 = arith.constant dense<0xFF800000> : vector<8xf32>
    %93 = vector.multi_reduction <maximumf>, %92, %cst_47 [1] : vector<8x8xf32> to vector<8xf32>
    %94 = vector.shape_cast %93 : vector<8xf32> to vector<8x1xf32>
    %95 = vector.broadcast %94 : vector<8x1xf32> to vector<8x8xf32>
    %96 = arith.subf %92, %95 : vector<8x8xf32>
    %97 = math.exp %96 : vector<8x8xf32>
    %cst_48 = arith.constant dense<0.000000e+00> : vector<8xf32>
    %98 = vector.multi_reduction <add>, %97, %cst_48 [1] : vector<8x8xf32> to vector<8xf32>
    %99 = vector.shape_cast %98 : vector<8xf32> to vector<8x1xf32>
    %100 = arith.truncf %97 : vector<8x8xf32> to vector<8x8xbf16>
    %cst_49 = arith.constant dense<0.000000e+00> : vector<8x8xf32>
    %101 = tpu.matmul %100, %89, %cst_49 {dimension_numbers = #tpu.dot_dimension_numbers<[1], [0], [0], [1], [0, 0, 1, 1], [], []>} : vector<8x8xbf16>, vector<8x8xbf16>, vector<8x8xf32> -> vector<8x8xf32>
    %102 = tpu.reciprocal %99 {approx = true} : vector<8x1xf32> -> vector<8x1xf32>
    %103 = vector.broadcast %102 : vector<8x1xf32> to vector<8x8xf32>
    %104 = arith.mulf %101, %103 : vector<8x8xf32>
    %105 = arith.truncf %104 : vector<8x8xf32> to vector<8x8xbf16>
    %c0_50 = arith.constant 0 : index
    %c0_51 = arith.constant 0 : index
    %c24_52 = arith.constant 24 : index
    %106 = vector.load %arg11[%c0_50, %c0_51, %c24_52] : memref<1x8x32xbf16, #tpu.memory_space<vmem>>, vector<1x8x8xbf16>
    %107 = vector.shape_cast %106 : vector<1x8x8xbf16> to vector<8x8xbf16>
    %108 = vector.shape_cast %105 : vector<8x8xbf16> to vector<1x8x8xbf16>
    tpu.vector_store %arg11[%c0_50, %c0_51, %c24_52], %108 {strides = array<i32>} : memref<1x8x32xbf16, #tpu.memory_space<vmem>>, vector<1x8x8xbf16>,
    return
  }
  func.func @transform_0(%arg0: i32, %arg1: i32, %arg2: i32) -> (i32, i32, i32) {
    %c0_i32 = arith.constant 0 : i32
    %c0_i32_0 = arith.constant 0 : i32
    %c0_i32_1 = arith.constant 0 : i32
    return %arg1, %c0_i32, %c0_i32_0 : i32, i32, i32
  }
  func.func @transform_1(%arg0: i32, %arg1: i32, %arg2: i32) -> (i32, i32, i32) {
    %c0_i32 = arith.constant 0 : i32
    %c0_i32_0 = arith.constant 0 : i32
    %c0_i32_1 = arith.constant 0 : i32
    return %arg0, %c0_i32, %c0_i32_0 : i32, i32, i32
  }
  func.func @transform_2(%arg0: i32, %arg1: i32, %arg2: i32) -> (i32, i32, i32) {
    %c0_i32 = arith.constant 0 : i32
    %c0_i32_0 = arith.constant 0 : i32
    %c0_i32_1 = arith.constant 0 : i32
    return %arg0, %c0_i32, %c0_i32_0 : i32, i32, i32
  }
  func.func @transform_3(%arg0: i32, %arg1: i32, %arg2: i32) -> (i32, i32, i32) {
    %c0_i32 = arith.constant 0 : i32
    %c0_i32_0 = arith.constant 0 : i32
    %c0_i32_1 = arith.constant 0 : i32
    return %arg0, %c0_i32, %c0_i32_0 : i32, i32, i32
  }
  func.func @transform_4(%arg0: i32, %arg1: i32, %arg2: i32) -> (i32, i32, i32) {
    %c0_i32 = arith.constant 0 : i32
    %c0_i32_0 = arith.constant 0 : i32
    %c0_i32_1 = arith.constant 0 : i32
    return %arg0, %c0_i32, %c0_i32_0 : i32, i32, i32
  }
  func.func @transform_5(%arg0: i32, %arg1: i32, %arg2: i32) -> (i32, i32, i32) {
    %c0_i32 = arith.constant 0 : i32
    %c0_i32_0 = arith.constant 0 : i32
    %c0_i32_1 = arith.constant 0 : i32
    return %arg0, %c0_i32, %c0_i32_0 : i32, i32, i32
  }
  func.func @transform_6(%arg0: i32, %arg1: i32, %arg2: i32) -> (i32, i32, i32) {
    %c0_i32 = arith.constant 0 : i32
    %c0_i32_0 = arith.constant 0 : i32
    %c0_i32_1 = arith.constant 0 : i32
    return %arg0, %c0_i32, %c0_i32_0 : i32, i32, i32
  }
  func.func @transform_7(%arg0: i32, %arg1: i32, %arg2: i32) -> (i32, i32, i32) {
    %c0_i32 = arith.constant 0 : i32
    %c0_i32_0 = arith.constant 0 : i32
    %c0_i32_1 = arith.constant 0 : i32
    return %arg1, %c0_i32, %c0_i32_0 : i32, i32, i32
  }
  func.func @transform_8(%arg0: i32, %arg1: i32, %arg2: i32) -> (i32, i32, i32) {
    %c0_i32 = arith.constant 0 : i32
    return %arg1, %arg2, %arg0 : i32, i32, i32
  }
}

</mosaic_0001>

<bundles_post_ra>
// kernel: tpu_custom_call.1
= control target key start
LH: loop header
LB: loop body
LE: loop exit
PB: predicated region body
PF: predicated region fallthrough
CT: control target
= control target key end

     0   :  { %s2191_s0 = inlined_call_operand.hbm [shape: f32[2,8,32], index: 0, kind: input, shape index: {}]   ;;  %s2192_s1 = inlined_call_operand.hbm [shape: bf16[1,32,32], index: 1, kind: input, shape index: {}]   ;;  %s2193_s2 = inlined_call_operand.hbm [shape: bf16[1,32,32], index: 2, kind: input, shape index: {}]   ;;  %s2194_s3 = inlined_call_operand.hbm [shape: bf16[1,32,32], index: 3, kind: input, shape index: {}]   ;;  %s2195_s4 = inlined_call_operand.vmem [shape: f32[1,1,32], index: 4, kind: input, shape index: {}]   ;;  %s2196_s5 = inlined_call_operand.vmem [shape: f32[1,1,32], index: 5, kind: input, shape index: {}]   ;;  %s2197_s6 = inlined_call_operand.vmem [shape: f32[1,1,32], index: 6, kind: input, shape index: {}]   ;;  %s2198_s7 = inlined_call_operand.vmem [shape: f32[2,1,8], index: 7, kind: input, shape index: {}]   ;;  %s2199_s8 = inlined_call_operand.hbm [shape: bf16[2,8,32], index: 8, kind: output, shape index: {}]  }
   0x1   :  { %2205 = sst [smem:[#allocation18_spill]] %s2192_s1 }
   0x2   :  { %2206 = sst [smem:[#allocation19_spill]] %s2193_s2 }
   0x3   :  { %2207 = sst [smem:[#allocation20_spill]] %s2194_s3 }
   0x4   :  { %13 = vsyncpa [#allocation5], 0 }
   0x5   :  { %15 = vsyncpa [#allocation5 + $0x1], 0 }
   0x6   :  { %16 = vsyncpa [#allocation8], 0 }
   0x7   :  { %17 = vsyncpa [#allocation11], 0 }
   0x8   :  { %18 = vsyncpa [#allocation6], 0 }
   0x9   :  { %20 = vsyncpa [#allocation6 + $0x1], 0  ;;  %s1903_s27 = smov 0   ;;  %s1905_s28 = smov 0  }
   0xa   :  { %s1907_s29 = smov 0   ;;  %s1909_s30 = smov 0  }
   0xb   :  { %s1911_s9 = smov 0   ;;  %s1913_s10 = smov 0  }
   0xc LB: > { %s1364_s11 = sadd.s32 4294967295, %s1841_s10   ;;  %s1365_s12 = sadd.s32 4294967294, %s1841_s10   ;;  %s1841_s10 = sphi %s1913_s10, %s26_s10   ;;  %s1837_s9 = sphi %s1911_s9, %s2230_s9   ;;  %s1833_s30 = sphi %s1909_s30, %s2229_s30   ;;  %s1829_s29 = sphi %s1907_s29, %s2228_s29   ;;  %s1825_s28 = sphi %s1905_s28, %s2227_s28   ;;  %s1821_s27 = sphi %s1903_s27, %s2226_s27  }
   0xd   : > { %p65_p0 = scmp.ne.s32.totalorder %s1825_s28, %s1821_s27  ;;  %p1937_p1 = scmp.eq.s32.totalorder %s1364_s11, 0 }
   0xe   : > { %p1941_p2 = scmp.eq.s32.totalorder %s1364_s11, 1  ;;  %p281_p3 = scmp.eq.s32.totalorder %s1365_s12, 1 }
   0xf   : > { %s2208_s13 = scalar_select %p1937_p1, 1, 0 }
  0x10   : > { %p1947_p4 = por %p1937_p1, %p65_p0  ;;  %p1366_p5 = scmp.ge.s32.totalorder %s1841_s10, 1 }
  0x11   : > { %p1952_p6 = por %p281_p3, %p65_p0  ;;  %p288_p7 = scmp.lt.s32.totalorder %s1841_s10, 3 }
  0x12   : > { %s2210_s15 = scalar_select %p1947_p4, 1, 0 }
  0x13   : > { %s2211_s16 = scalar_select %p1952_p6, 1, 0 }
  0x14   : > { %p1957_p8 = pnand %p1366_p5, %p288_p7  ;;  %s1843_s18 = smov [#allocation7]  }
  0x15   : > { %s303_s19 = sshll.u32 %s1843_s18, 4  ;;  %s1844_s21 = smov [#allocation9]   ;;  %s304_s19 = int_to_ptr.vmem [resolvable:$true] %s303_s19 }
  0x16   : > { %s2212_s17 = scalar_select %p1957_p8, 1, 0 }
  0x17   : > { %p1532_p9 = pneg %p1957_p8  ;;  %s319_s22 = sshll.u32 %s1844_s21, 4  ;;  %s320_s22 = int_to_ptr.vmem [resolvable:$true] %s319_s22 }
  0x18   : > { %s1845_s23 = smov [#allocation10]   ;;  %s1658_s25 = scalar_lea.vmem %s304_s19, 256 }
  0x19   : > { %p1966_p11 = pnand %p1532_p9, %p1937_p1  ;;  %s335_s24 = sshll.u32 %s1845_s23, 4  ;;  %s336_s24 = int_to_ptr.vmem [resolvable:$true] %s335_s24 }
  0x1a   : > { %p1659_p13 = scmp.ne.s32.totalorder %s304_s19, %s1658_s25  ;;  %p1666_p5 = scmp.lt.s32.totalorder %s304_s19, %s304_s19 }
  0x1b   : > { %p1649_p12 = pneg %p1966_p11  ;;  %p1667_p7 = scmp.lt.s32.totalorder %s1658_s25, %s1658_s25 }
  0x1d   : > { %p1661_p0 = pnand %p1659_p13, %p1649_p12  ;;  %p1668_p9 = por %p1667_p7, %p1666_p5 }
  0x1f   : > { %p1662_p3 = pneg %p1661_p0 }
  0x21   : > { %p1669_p10 = pnand %p1668_p9, %p1662_p3 }
  0x23   : > { %1672 = shalt.err (!%p1669_p10)
}
  0x24   : > { %s1846_s26 = smov 64   ;;  %s1847_s11 = smov 4  }
  0x25   : > { %s2214_s1 = sld [smem:[#allocation18_spill]]  ;;  %s1684_s21 = scalar_lea.vmem %s320_s22, 256 }
  0x26   : > { %p1685_p6 = scmp.ne.s32.totalorder %s320_s22, %s1684_s21  ;;  %p1692_p1 = scmp.lt.s32.totalorder %s320_s22, %s320_s22 }
  0x27   : > { %p1693_p4 = scmp.lt.s32.totalorder %s1684_s21, %s1684_s21 }
  0x28   : > { %p1687_p13 = pnand %p1685_p6, %p1649_p12 }
  0x29   : > { %p1694_p5 = por %p1693_p4, %p1692_p1 }
  0x2a   : > { %p1688_p0 = pneg %p1687_p13 }
  0x2b   : > { %1535 = dma.hbm_to_vmem [thread:$0]  (!%p1966_p11), %s2214_s1, 256, %s304_s19, [#allocation8], %s1846_s26, %s1846_s26, %s1847_s11  }
  0x2c   : > { %p1695_p3 = pnand %p1694_p5, %p1688_p0 }
  0x2e   : > { %1698 = shalt.err (!%p1695_p3)
}
  0x2f   : > { %s2215_s2 = sld [smem:[#allocation19_spill]]  ;;  %s1710_s19 = scalar_lea.vmem %s336_s24, 256 }
  0x30   : > { %p1711_p10 = scmp.ne.s32.totalorder %s336_s24, %s1710_s19  ;;  %p1718_p9 = scmp.lt.s32.totalorder %s336_s24, %s336_s24 }
  0x31   : > { %p1719_p13 = scmp.lt.s32.totalorder %s1710_s19, %s1710_s19 }
  0x32   : > { %p1713_p7 = pnand %p1711_p10, %p1649_p12 }
  0x33   : > { %p1720_p8 = por %p1719_p13, %p1718_p9 }
  0x34   : > { %p1714_p6 = pneg %p1713_p7 }
  0x35   : > { %1538 = dma.hbm_to_vmem [thread:$0]  (!%p1966_p11), %s2215_s2, 256, %s320_s22, [#allocation8], %s1846_s26, %s1846_s26, %s1847_s11  }
  0x36   : > { %p1721_p1 = pnand %p1720_p8, %p1714_p6 }
  0x38   : > { %1724 = shalt.err (!%p1721_p1)
}
  0x39   : > { %s2216_s3 = sld [smem:[#allocation20_spill]]  ;;  %s52_s22 = sadd.s32 1, %s1829_s29 }
  0x3a   : > { %s41_s21 = sadd.s32 1, %s1837_s9  ;;  %p59_p4 = scmp.ne.s32.totalorder %s1829_s29, %s1825_s28 }
  0x3b   : > { %p43_p8 = scmp.ge.s32.totalorder %s41_s21, 2  ;;  %p60_p12 = scmp.eq.s32.totalorder %s1841_s10, 0 }
  0x3c   : > { %p2003_p0 = por %p1941_p2, %p59_p4  ;;  %p1553_p5 = scmp.lt.s32.totalorder %s1841_s10, 2 }
  0x3d   : > { %s2232_s21 = smov (%p43_p8, %s41_s21), 0  ;;  %p61_p3 = por %p60_p12, %p59_p4 }
  0x3e   : > { %2218 = sst [smem:[#allocation17_spill]] %s2232_s21  ;;  %s367_s23 = sand.u32 1, %s1829_s29  }
  0x3f   : > { %1541 = dma.hbm_to_vmem [thread:$0]  (!%p1966_p11), %s2216_s3, 256, %s336_s24, [#allocation11], %s1846_s26, %s1846_s26, %s1847_s11  }
  0x40   : > { %s49_s25 = ssub.s32 %s1837_s9, %s2232_s21  ;;  %s1374_s24 = sshll.u32 %s367_s23, 3 }
  0x41   : > { %p50_p10 = scmp.eq.s32.totalorder %s49_s25, 0  ;;  %s1375_s26 = sshll.u32 %s1837_s9, 7 }
  0x42   : > { %s376_s14 = scalar_lea.hbm %s2191_s0, %s1375_s26  ;;  %s371_s18 = scalar_lea.vmem [#allocation4], %s1374_s24 }
  0x43   : > { %s2015_s11 = scalar_select %p50_p10, %s1829_s29, %s52_s22  }
  0x44   : > { %s378_s1 = sshll.u32 %s371_s18, 4  ;;  %p2022_p2 = pnand %p1553_p5, %p61_p3  ;;  %s379_s1 = int_to_ptr.vmem [resolvable:$true] %s378_s1 }
  0x45   : > { %s368_s3 = scalar_lea.sflag [#allocation5], %s367_s23  ;;  %s1738_s25 = scalar_lea.vmem %s379_s1, 128 }
  0x46   : > { %p1727_p11 = pneg %p2022_p2  ;;  %p1739_p7 = scmp.ne.s32.totalorder %s379_s1, %s1738_s25 }
  0x47   : > { %s1848_s22 = smov [#allocation4]  }
  0x48   : > { %p1741_p6 = pnand %p1739_p7, %p1727_p11  ;;  %s1743_s21 = sshll.u32 %s1848_s22, 4  ;;  %s1744_s21 = int_to_ptr.vmem [resolvable:$false] %s1743_s21 }
  0x49   : > { %s1745_s26 = scalar_lea.vmem %s1744_s21, 256  ;;  %p1746_p13 = scmp.lt.s32.totalorder %s379_s1, %s1744_s21 }
  0x4a   : > { %p1742_p9 = pneg %p1741_p6  ;;  %p1747_p1 = scmp.lt.s32.totalorder %s1745_s26, %s1738_s25 }
  0x4c   : > { %p1748_p4 = por %p1747_p1, %p1746_p13 }
  0x4e   : > { %p1749_p8 = pnand %p1748_p4, %p1742_p9 }
  0x50   : > { %1752 = shalt.err (!%p1749_p8)
}
  0x51   : > { %1545 = dma.hbm_to_vmem [thread:$0]  (!%p2022_p2), %s376_s14, 128, %s379_s1, %s368_s3  }
  0x52   : > { %p2220_p12 = scmp.ne.s32.totalorder %s2212_s17, 0 }
  0x53   : > { %s2033_s23 = sand.u32 (!%p2220_p12), 1, %s1825_s28   ;;  %p2221_p5 = scmp.ne.s32.totalorder (!%p2220_p12), %s2210_s15, 0 }
  0x54   : > { %393 = sbr.rel (%p2220_p12) target bundleno = 1130 (0x46a), region = 52  ;;  %s1377_s24 = sshll.u32 (!%p2220_p12), %s2033_s23, 3 }
  0x55   : > { %s396_s19 = scalar_lea.sflag (!%p2220_p12), [#allocation5], %s2033_s23  ;;  %s399_s12 = scalar_lea.vmem (!%p2220_p12), [#allocation4], %s1377_s24 }
  0x59   : > { %1804 = dma.done.wait (%p2221_p5), %s396_s19, 128  }
  0x5a   : > { %1806 = vsyncadd (%p2221_p5), %s396_s19, 4294967168  ;;  %p2222_p3 = scmp.ne.s32.totalorder %s2208_s13, 0 }
  0x5c   : > { %1808 = dma.done.wait (%p2222_p3), [#allocation8], 512  }
  0x5d   : > { %1810 = vsyncadd (%p2222_p3), [#allocation8], 4294966784 }
  0x5e   : > { %1812 = dma.done.wait (%p2222_p3), [#allocation11], 256  }
  0x5f   : > { %1814 = vsyncadd (%p2222_p3), [#allocation11], 4294967040  ;;  %v1849_v0 = vmov 0.0   ;;  %vm1850_vm0 = vmmov 0   ;;  %v1619_v1 = vld [vmem:[#allocation9 + $0x8] sm:$0xff]   ;;  %v1620_v2 = vld [vmem:[#allocation9] sm:$0xff]  }
  0x60   : > { %1444 = vmatprep.subr.bf16.mxu0 %v1849_v0  ;;  %1448 = vmatprep.mubr.msk.bf16.mxu0 %vm1850_vm0, %v1849_v0  ;;  %v473_v3 = vld [vmem:[%s399_s12] sm:$0xff]  ;;  %vm498_vm1 = vcmask 261120   ;;  %v1621_v5 = vld [vmem:[#allocation7 + $0x8] sm:$0xff]   ;;  %v1622_v6 = vld [vmem:[#allocation7] sm:$0xff]   ;;  %vm606_vm2 = vcmask 257024   ;;  %vm692_vm3 = vcmask 64512  }
  0x61   : > { %1452 = vmatprep.subr.bf16.mxu1 %v1849_v0  ;;  %1456 = vmatprep.mubr.msk.bf16.mxu1 %vm1850_vm0, %v1849_v0  ;;  %v474_v4 = vpack.c.bf16 %v473_v3, %v473_v3  ;;  %v1623_v7 = vld [vmem:[#allocation10 + $0x8] sm:$0xff]   ;;  %v1624_v8 = vld [vmem:[#allocation10] sm:$0xff]   ;;  %s1851_s15 = smov 112   ;;  %s1852_s17 = smov 120   ;;  %vm752_vm4 = vcmask 1043456   ;;  %vm799_vm5 = vcmask 60416  }
  0x62   : > { %1445 = vmatpush3.bf16.msra.mxu0 %v1619_v1  ;;  %1453 = vmatpush3.bf16.msra.mxu1 %v1623_v7  ;;  %v1382_v9 = vld [vmem:[%s2196_s5] ss:$0 sm:$0xff]  ;;  %s1853_s21 = smov 104   ;;  %p465_p10 = scmp.lt.s32.totalorder %s1833_s30, 1  ;;  %vm927_vm6 = vcmask 126016   ;;  %vm1054_vm7 = vcmask 191616  }
  0x63   : > { %1446 = vmatprep.subr.bf16.mxu0 %v1849_v0  ;;  %1454 = vmatprep.subr.bf16.mxu1 %v1849_v0  ;;  %v1390_v16 = vld [vmem:[%s2195_s4] ss:$0 sm:$0xff]  ;;  %s1381_s19 = sshll.u32 %s2033_s23, 2  ;;  %s1854_s1 = smov 8   ;;  %vm1181_vm8 = vcmask 257216  }
  0x64   : > { %v1386_v29 = vld [vmem:[%s2197_s6] ss:$0 sm:$0xff]  ;;  %s466_s25 = scalar_select %p465_p10, %s1833_s30, 1 }
  0x65   : > { %s2138_s12 = scalar_lea.vmem [#allocation12], %s1381_s19  ;;  %s1855_s2 = smov 16  }
  0x66   : > { %1447 = vmatpush3.bf16.msra.mxu0 %v1620_v2  ;;  %1455 = vmatpush3.bf16.msra.mxu1 %v1624_v8  ;;  %s467_s24 = scalar_lea.vmem %s2198_s7, %s466_s25  ;;  %s1856_s3 = smov 24  }
  0x67   : > { %1460 = vmatprep.subr.bf16.mxu0 %v1849_v0  ;;  %1468 = vmatprep.subr.bf16.mxu1 %v1849_v0  ;;  %v1394_v47 = vld [vmem:[%s467_s24] ss:$0 sm:$0xff]  ;;  %s1413_s13 = sshll.u32 %s1833_s30, 6  ;;  %s1184_s18 = scalar_lea.sflag [#allocation6], %s2033_s23 }
  0x68   : > { %s2148_s14 = scalar_lea.hbm %s2199_s8, %s1413_s13  ;;  %s1857_s22 = smov [#allocation12]  }
  0x69   : > { %1449 = vmatmul.mubr.msk.bf16.vlgmr.msra.gmra.mxu0 %vm498_vm1, %v474_v4  ;;  %1457 = vmatmul.mubr.msk.bf16.vlgmr.msra.gmra.mxu1 %vm498_vm1, %v474_v4  ;;  %s1757_s26 = sshll.u32 %s1857_s22, 4  ;;  %s1758_s26 = int_to_ptr.vmem [resolvable:$false] %s1757_s26 }
  0x6a   : > { %1461 = vmatpush3.bf16.msra.mxu0 %v1621_v5  ;;  %1464 = vmatprep.mubr.msk.bf16.mxu0 %vm1850_vm0, %v1849_v0  ;;  %s1759_s30 = scalar_lea.vmem %s1758_s26, 128 }
  0x6b   : > { %1462 = vmatprep.subr.bf16.mxu0 %v1849_v0  ;;  %1470 = vmatprep.mubr.msk.bf16.mxu1 %vm1850_vm0, %v1849_v0 }
  0x6e   : > { %1463 = vmatpush3.bf16.msra.mxu0 %v1622_v6 }
  0x6f   : > { %1474 = vmatprep.subr.bf16.mxu0 %v1849_v0 }
  0x71   : > { %1465 = vmatmul.mubr.msk.bf16.vlgmr.msra.gmra.mxu0 %vm498_vm1, %v474_v4 }
  0x72   : > { %1476 = vmatprep.mubr.msk.bf16.mxu0 %vm1850_vm0, %v1849_v0 }
 0x129   : > { %v536_v10 = vpop.f32.mrf.mxu0  ;;  %v599_v30 = vpop.f32.mrf.mxu1 }
 0x12a   : > { %v537_v11 = vadd.f32 %v1382_v9, %v536_v10  ;;  %v600_v31 = vadd.f32 %v1386_v29, %v599_v30 }
 0x12b   : > { %v1450_v12 = vpop.f32.mrf.mxu0  ;;  %v1458_v32 = vpop.f32.mrf.mxu1 }
 0x12c   : > { %v605_v13 = vpack.c.bf16 %v537_v11, %v537_v11  ;;  %v608_v33 = vpack.c.bf16 %v600_v31, %v600_v31 }
 0x12d   : > { %v539_v14 = vpop.f32.mrf.mxu0  ;;  %v602_v34 = vpop.f32.mrf.mxu1 }
 0x12e   : > { %607 = vst.msk [vmem:[#allocation2] sm:$0xf] %vm606_vm2, %v605_v13  ;;  %609 = vst.msk [vmem:[#allocation3] sm:$0xf] %vm606_vm2, %v608_v33 }
 0x12f   : > { %v1451_v15 = vpop.f32.mrf.mxu0  ;;  %v1459_v35 = vpop.f32.mrf.mxu1 }
 0x131   : > { %v675_v17 = vpop.f32.mrf.mxu0 }
 0x132   : > { %v676_v18 = vadd.f32 %v1390_v16, %v675_v17 }
 0x133   : > { %v1466_v19 = vpop.f32.mrf.mxu0 }
 0x134   : > { %v681_v20 = vmul.f32 0.35355338, %v676_v18 }
 0x135   : > { %v678_v21 = vpop.f32.mrf.mxu0  ;;  %v684_v22 = vld [vmem:[#allocation2] sm:$0xf]  ;;  %v685_v36 = vld [vmem:[#allocation3] sm:$0xf] }
 0x136   : > { %v1625_v23 = vld [vmem:[#allocation2] ss:$0 sps:$4 sm:$0xff]   ;;  %v697_v24 = vsel %vm692_vm3, %v684_v22, 0  ;;  %v682_v26 = vpack.c.bf16 %v681_v20, %v681_v20  ;;  %v754_v37 = vsel %vm752_vm4, %v685_v36, 0  ;;  %v1628_v7 = vld [vmem:[#allocation3] ss:$0 sps:$4 sm:$0xff]  }
 0x137   : > { %v1626_v25 = vld [vmem:[#allocation2] ss:$0 sps:$4 sm:$0xff]   ;;  %1469 = vmatpush3.bf16.xpose.msra.mxu1 %v697_v24  ;;  %936 = vrot.lane.b32.xlu1 %v1625_v23, %s1851_s15  ;;  %v1467_v27 = vpop.f32.mrf.mxu0  ;;  %v1629_v10 = vld [vmem:[#allocation3] ss:$0 sps:$4 sm:$0xff]  }
 0x138   : > { %809 = vrot.lane.b32.xlu0 %v1626_v25, %s1852_s17  ;;  %1480 = vmatprep.subr.bf16.mxu1 %v1849_v0  ;;  %v1627_v28 = vld [vmem:[#allocation2] ss:$0 sps:$4 sm:$0xff]   ;;  %v1630_v14 = vld [vmem:[#allocation3] ss:$0 sps:$4 sm:$0xff]  }
 0x139   : > { %1475 = vmatpush3.bf16.msra.mxu0 %v754_v37 }
 0x13a   : > { %1486 = vmatprep.subr.bf16.mxu0 %v1849_v0 }
 0x13b   : > { %931 = vrot.lane.b32.xlu1 %v682_v26, %s1851_s15 }
 0x13c   : > { %804 = vrot.lane.b32.xlu0 %v682_v26, %s1852_s17 }
 0x13e   : > { %1471 = vmatmul.mubr.msk.bf16.vlgmr.msra.gmra.mxu1 %vm692_vm3, %v682_v26 }
 0x13f   : > { %1058 = vrot.lane.b32.xlu1 %v682_v26, %s1853_s21  ;;  %1482 = vmatprep.mubr.msk.bf16.mxu1 %vm1850_vm0, %v1849_v0 }
 0x140   : > { %1063 = vrot.lane.b32.xlu0 %v1627_v28, %s1853_s21 }
 0x1a9   : > { %v937_v40 = vpop.permute.xlu1 %936 }
 0x1aa   : > { %v810_v38 = vpop.permute.xlu0 %809  ;;  %v942_v42 = vsel %vm692_vm3, %v937_v40, 0 }
 0x1ab   : > { %v815_v39 = vsel %vm692_vm3, %v810_v38, 0 }
 0x1ac   : > { %1481 = vmatpush3.bf16.xpose.msra.mxu1 %v815_v39 }
 0x1ad   : > { %1492 = vmatprep.subr.bf16.mxu1 %v1849_v0  ;;  %v932_v44 = vpop.permute.xlu1 %931 }
 0x1ae   : > { %v805_v41 = vpop.permute.xlu0 %804 }
 0x1b1   : > { %v1059_v46 = vpop.permute.xlu1 %1058 }
 0x1b2   : > { %v1064_v43 = vpop.permute.xlu0 %1063 }
 0x1b3   : > { %1483 = vmatmul.mubr.msk.bf16.vlgmr.msra.gmra.mxu1 %vm692_vm3, %v805_v41  ;;  %v1069_v45 = vsel %vm692_vm3, %v1064_v43, 0 }
 0x1b4   : > { %1493 = vmatpush3.bf16.xpose.msra.mxu1 %v942_v42  ;;  %1494 = vmatprep.mubr.msk.bf16.mxu1 %vm1850_vm0, %v1849_v0 }
 0x1b5   : > { %1504 = vmatprep.subr.bf16.mxu1 %v1849_v0 }
 0x1bb   : > { %1495 = vmatmul.mubr.msk.bf16.vlgmr.msra.gmra.mxu1 %vm692_vm3, %v932_v44 }
 0x1bc   : > { %1505 = vmatpush3.bf16.xpose.msra.mxu1 %v1069_v45  ;;  %1506 = vmatprep.mubr.msk.bf16.mxu1 %vm1850_vm0, %v1849_v0 }
 0x1c3   : > { %1507 = vmatmul.mubr.msk.bf16.vlgmr.msra.gmra.mxu1 %vm692_vm3, %v1059_v46 }
 0x1fe   : > { %v733_v48 = vpop.f32.mrf.mxu1 }
 0x1ff   : > { %v734_v49 = vadd.f32 %v1394_v47, %v733_v48 }
 0x200   : > { %v1472_v50 = vpop.f32.mrf.mxu1 }
 0x201   : > { %v739_v51 = vsel %vm692_vm3, %v734_v49, -inf }
 0x202   : > { %740 = vmax.xlane.f32.xlu0 %v739_v51  ;;  %v736_v52 = vpop.f32.mrf.mxu1 }
 0x204   : > { %v1473_v53 = vpop.f32.mrf.mxu1 }
 0x273   : > { %v851_v54 = vpop.f32.mrf.mxu1 }
 0x274   : > { %v852_v55 = vadd.f32 %v1394_v47, %v851_v54 }
 0x275   : > { %v1484_v56 = vpop.f32.mrf.mxu1 }
 0x276   : > { %v857_v57 = vsel %vm692_vm3, %v852_v55, -inf }
 0x277   : > { %858 = vmax.xlane.f32.xlu1 %v857_v57  ;;  %v854_v58 = vpop.f32.mrf.mxu1 }
 0x279   : > { %v1485_v59 = vpop.f32.mrf.mxu1 }
 0x27b   : > { %v978_v60 = vpop.f32.mrf.mxu1 }
 0x27c   : > { %v979_v61 = vadd.f32 %v1394_v47, %v978_v60 }
 0x27d   : > { %v1496_v62 = vpop.f32.mrf.mxu1 }
 0x27e   : > { %v984_v63 = vsel %vm692_vm3, %v979_v61, -inf }
 0x27f   : > { %985 = vmax.xlane.f32.xlu0 %v984_v63  ;;  %v981_v1 = vpop.f32.mrf.mxu1 }
 0x281   : > { %v1497_v2 = vpop.f32.mrf.mxu1 }
 0x283   : > { %v1105_v3 = vpop.f32.mrf.mxu1 }
 0x284   : > { %v1106_v4 = vadd.f32 %v1394_v47, %v1105_v3 }
 0x285   : > { %v1508_v5 = vpop.f32.mrf.mxu1 }
 0x286   : > { %v1111_v6 = vsel %vm692_vm3, %v1106_v4, -inf }
 0x287   : > { %1112 = vmax.xlane.f32.xlu0 %v1111_v6  ;;  %v1108_v8 = vpop.f32.mrf.mxu1 }
 0x288   : > { %870 = vrot.lane.b32.xlu1 %v1628_v7, %s1852_s17 }
 0x289   : > { %v1509_v9 = vpop.f32.mrf.mxu1 }
 0x28b   : > { %v741_v11 = vpop.xlane.xlu0 %740 }
 0x28c   : > { %v742_v12 = vsub.f32 %v734_v49, %v741_v11  ;;  %1124 = vrot.lane.b32.xlu1 %v1629_v10, %s1853_s21 }
 0x28e   : > { %v743_v13 = vmul.f32 1.442695, %v742_v12 }
 0x290   : > { %1631 = vpow2.f32 %v743_v13 }
 0x29d   : > { %v1632_v15 = vpop.eup %1631  ;;  %997 = vrot.lane.b32.xlu0 %v1630_v14, %s1851_s15  ;;  %s1199_s15 = sshll.u32 %s2138_s12, 4  ;;  %s1200_s15 = int_to_ptr.vmem [resolvable:$true] %s1199_s15 }
 0x29e   : > { %v748_v16 = vpack.c.bf16 %v1632_v15, %v1632_v15  ;;  %v745_v33 = vsel %vm692_vm3, %v1632_v15, 0.0  ;;  %s1753_s25 = scalar_lea.vmem %s1200_s15, 64  ;;  %p1760_p6 = scmp.lt.s32.totalorder %s1200_s15, %s1758_s26 }
 0x29f   : > { %p1754_p2 = scmp.ne.s32.totalorder %s1200_s15, %s1753_s25  ;;  %p1761_p9 = scmp.lt.s32.totalorder %s1759_s30, %s1753_s25 }
 0x2a0   : > { %1477 = vmatmul.mubr.msk.bf16.vlgmr.msra.gmra.mxu0 %vm692_vm3, %v748_v16 }
 0x2a1   : > { %1488 = vmatprep.mubr.msk.bf16.mxu0 %vm1850_vm0, %v1849_v0  ;;  %p1755_p11 = pnand %p1754_p2, %p2003_p0  ;;  %p1762_p13 = por %p1761_p9, %p1760_p6 }
 0x2a3   : > { %p1756_p7 = pneg %p1755_p11 }
 0x2a5   : > { %p1763_p1 = pnand %p1762_p13, %p1756_p7 }
 0x300   : > { %v859_v17 = vpop.xlane.xlu1 %858 }
 0x301   : > { %v860_v18 = vsub.f32 %v852_v55, %v859_v17 }
 0x303   : > { %v861_v19 = vmul.f32 1.442695, %v860_v18 }
 0x304   : > { %v871_v20 = vpop.permute.xlu1 %870 }
 0x305   : > { %1633 = vpow2.f32 %v861_v19  ;;  %v876_v21 = vsel %vm752_vm4, %v871_v20, 0 }
 0x306   : > { %1487 = vmatpush3.bf16.msra.mxu0 %v876_v21 }
 0x307   : > { %1498 = vmatprep.subr.bf16.mxu0 %v1849_v0 }
 0x308   : > { %v986_v22 = vpop.xlane.xlu0 %985  ;;  %v1125_v35 = vpop.permute.xlu1 %1124 }
 0x309   : > { %v987_v23 = vsub.f32 %v979_v61, %v986_v22  ;;  %v1130_v38 = vsel %vm752_vm4, %v1125_v35, 0 }
 0x30b   : > { %v988_v24 = vmul.f32 1.442695, %v987_v23 }
 0x30d   : > { %1635 = vpow2.f32 %v988_v24 }
 0x310   : > { %v1113_v25 = vpop.xlane.xlu0 %1112 }
 0x311   : > { %v1114_v26 = vsub.f32 %v1106_v4, %v1113_v25 }
 0x312   : > { %v1634_v27 = vpop.eup %1633 }
 0x313   : > { %v1115_v28 = vmul.f32 1.442695, %v1114_v26  ;;  %v863_v29 = vsel %vm692_vm3, %v1634_v27, 0.0  ;;  %v866_v30 = vpack.c.bf16 %v1634_v27, %v1634_v27 }
 0x314   : > { %864 = vadd.xlane.f32.xlu1 %v863_v29  ;;  %v998_v31 = vpop.permute.xlu0 %997 }
 0x315   : > { %1637 = vpow2.f32 %v1115_v28  ;;  %v1003_v32 = vsel %vm752_vm4, %v998_v31, 0  ;;  %1489 = vmatmul.mubr.msk.bf16.vlgmr.msra.gmra.mxu0 %vm692_vm3, %v866_v30 }
 0x316   : > { %1499 = vmatpush3.bf16.msra.mxu0 %v1003_v32  ;;  %1500 = vmatprep.mubr.msk.bf16.mxu0 %vm1850_vm0, %v1849_v0 }
 0x317   : > { %1510 = vmatprep.subr.bf16.mxu0 %v1849_v0 }
 0x318   : > { %746 = vadd.xlane.f32.xlu1 %v745_v33 }
 0x31a   : > { %v1636_v34 = vpop.eup %1635 }
 0x31b   : > { %v990_v36 = vsel %vm692_vm3, %v1636_v34, 0.0  ;;  %v993_v37 = vpack.c.bf16 %v1636_v34, %v1636_v34 }
 0x31c   : > { %991 = vadd.xlane.f32.xlu0 %v990_v36 }
 0x31d   : > { %1501 = vmatmul.mubr.msk.bf16.vlgmr.msra.gmra.mxu0 %vm692_vm3, %v993_v37 }
 0x31e   : > { %1511 = vmatpush3.bf16.msra.mxu0 %v1130_v38  ;;  %1512 = vmatprep.mubr.msk.bf16.mxu0 %vm1850_vm0, %v1849_v0 }
 0x322   : > { %v1638_v39 = vpop.eup %1637 }
 0x323   : > { %v1117_v40 = vsel %vm692_vm3, %v1638_v39, 0.0  ;;  %v1120_v41 = vpack.c.bf16 %v1638_v39, %v1638_v39 }
 0x324   : > { %1118 = vadd.xlane.f32.xlu0 %v1117_v40 }
 0x325   : > { %1513 = vmatmul.mubr.msk.bf16.vlgmr.msra.gmra.mxu0 %vm692_vm3, %v1120_v41 }
 0x360   : > { %v790_v42 = vpop.f32.mrf.mxu0 }
 0x362   : > { %v1478_v43 = vpop.f32.mrf.mxu0 }
 0x364   : > { %v793_v44 = vpop.f32.mrf.mxu0 }
 0x366   : > { %v1479_v45 = vpop.f32.mrf.mxu0 }
 0x39d   : > { %v865_v46 = vpop.xlane.xlu1 %864 }
 0x3a1   : > { %v747_v47 = vpop.xlane.xlu1 %746 }
 0x3a2   : > { %1639 = vrcp.f32 %v747_v47 }
 0x3a3   : > { %1641 = vrcp.f32 %v865_v46 }
 0x3a5   : > { %v992_v0 = vpop.xlane.xlu0 %991 }
 0x3a6   : > { %1643 = vrcp.f32 %v992_v0 }
 0x3ad   : > { %v1119_v52 = vpop.xlane.xlu0 %1118 }
 0x3ae   : > { %1645 = vrcp.f32 %v1119_v52 }
 0x3af   : > { %v1640_v48 = vpop.eup %1639 }
 0x3b0   : > { %v797_v49 = vmul.f32 %v1640_v48, %v790_v42  ;;  %v1642_v51 = vpop.eup %1641 }
 0x3b2   : > { %v798_v50 = vpack.c.bf16 %v797_v49, %v797_v49 }
 0x3b3   : > { %v1644_v59 = vpop.eup %1643 }
 0x3b4   : > { %800 = vst.msk [vmem:[%s2138_s12] sm:$0xf] %vm799_vm5, %v798_v50 }
 0x3bb   : > { %v1646_v3 = vpop.eup %1645 }
 0x3d5   : > { %v912_v53 = vpop.f32.mrf.mxu0 }
 0x3d6   : > { %v919_v54 = vmul.f32 %v1642_v51, %v912_v53 }
 0x3d7   : > { %v1490_v55 = vpop.f32.mrf.mxu0 }
 0x3d8   : > { %v1416_v56 = vpack.c.bf16 %v919_v54, %v919_v54 }
 0x3d9   : > { %v915_v57 = vpop.f32.mrf.mxu0 }
 0x3da   : > { %924 = vrot.lane.b32.xlu0 %v1416_v56, %s1854_s1 }
 0x3db   : > { %v1491_v58 = vpop.f32.mrf.mxu0 }
 0x3dd   : > { %v1039_v60 = vpop.f32.mrf.mxu0 }
 0x3de   : > { %v1046_v61 = vmul.f32 %v1644_v59, %v1039_v60 }
 0x3df   : > { %v1502_v62 = vpop.f32.mrf.mxu0 }
 0x3e0   : > { %v1417_v63 = vpack.c.bf16 %v1046_v61, %v1046_v61 }
 0x3e1   : > { %v1042_v1 = vpop.f32.mrf.mxu0 }
 0x3e2   : > { %1051 = vrot.lane.b32.xlu1 %v1417_v63, %s1855_s2 }
 0x3e3   : > { %v1503_v2 = vpop.f32.mrf.mxu0 }
 0x3e5   : > { %v1166_v4 = vpop.f32.mrf.mxu0 }
 0x3e6   : > { %v1173_v5 = vmul.f32 %v1646_v3, %v1166_v4 }
 0x3e7   : > { %v1514_v6 = vpop.f32.mrf.mxu0 }
 0x3e8   : > { %v1418_v7 = vpack.c.bf16 %v1173_v5, %v1173_v5 }
 0x3e9   : > { %v1169_v8 = vpop.f32.mrf.mxu0 }
 0x3ea   : > { %1178 = vrot.lane.b32.xlu1 %v1418_v7, %s1856_s3 }
 0x3eb   : > { %v1515_v9 = vpop.f32.mrf.mxu0 }
 0x44c   : > { %v925_v10 = vpop.permute.xlu0 %924 }
 0x44d   : > { %928 = vst.msk [vmem:[%s2138_s12] sm:$0xf] %vm927_vm6, %v925_v10 }
 0x454   : > { %v1052_v11 = vpop.permute.xlu1 %1051 }
 0x455   : > { %1055 = vst.msk [vmem:[%s2138_s12] sm:$0xf] %vm1054_vm7, %v1052_v11 }
 0x45c   : > { %v1179_v12 = vpop.permute.xlu1 %1178 }
 0x45d   : > { %1182 = vst.msk [vmem:[%s2138_s12] sm:$0xf] %vm1181_vm8, %v1179_v12 }
 0x45e   : > { %1766 = shalt.err (!%p1763_p1)
}
 0x45f   : > { %s1767_s24 = scalar_lea.hbm %s2148_s14, 64  ;;  %s1771_s12 = scalar_lea.hbm %s2199_s8, 128 }
 0x460   : > { %p1768_p4 = scmp.ne.s32.totalorder %s2148_s14, %s1767_s24  ;;  %p1772_p5 = scmp.lt.s32.totalorder %s2148_s14, %s2199_s8 }
 0x461   : > { %p1773_p3 = scmp.lt.s32.totalorder %s1771_s12, %s1767_s24 }
 0x462   : > { %p1769_p8 = pnand %p1768_p4, %p2003_p0 }
 0x463   : > { %p1774_p10 = por %p1773_p3, %p1772_p5 }
 0x464   : > { %p1770_p12 = pneg %p1769_p8 }
 0x466   : > { %p1775_p2 = pnand %p1774_p10, %p1770_p12 }
 0x468   : > { %1778 = shalt.err (!%p1775_p2)
}
 0x469   : > { %1530 = dma.vmem_to_hbm [thread:$0]  (%p2003_p0), %s1200_s15, 64, %s2148_s14, %s1184_s18  }
 0x46a PF: > { %s1211_s3 = sand.u32 1, %s1821_s27   ;;  %p2223_p11 = scmp.ne.s32.totalorder %s2211_s16, 0 }
 0x46b   : > { %p2224_p7 = scmp.ge.s32.totalorder %s1841_s10, 2  ;;  %s1212_s13 = scalar_lea.sflag [#allocation6], %s1211_s3 }
 0x46d   : > { %p1547_p6 = pnand %p2224_p7, %p2223_p11 }
 0x46f   : > { %p1548_p9 = pneg %p1547_p6 }
 0x471   : > { %1816 = dma.done.wait (%p1548_p9), %s1212_s13, 64  }
 0x472   : > { %1818 = vsyncadd (%p1548_p9), %s1212_s13, 4294967232  ;;  %s26_s10 = sadd.s32 1, %s1841_s10   ;;  %s2225_s20 = sld [smem:[#allocation17_spill]] }
 0x473   : > { %p23_p13 = scmp.ge.s32.totalorder %s26_s10, 4   ;;  %s2226_s27 = smov %s1825_s28 }
 0x474   : > { %s2227_s28 = smov %s1829_s29  ;;  %s2228_s29 = smov %s2015_s11 }
 0x475   : > { %s2229_s30 = smov %s1837_s9  ;;  %25 = sbr.rel (!%p23_p13) target bundleno = 12 (0xc), region = 129 }
 0x478   : > { %s2230_s9 = smov %s2225_s20 }
 0x47a   :  { %1217 = vsyncpa [#allocation5], 1 }
 0x47b   :  { %1219 = vsyncpa [#allocation5 + $0x1], 1 }
 0x47c   :  { %1220 = vsyncpa [#allocation8], 1 }
 0x47d   :  { %1221 = vsyncpa [#allocation11], 1 }
 0x47e   :  { %1222 = vsyncpa [#allocation6], 1 }
 0x47f   :  { %1224 = vsyncpa [#allocation6 + $0x1], 1 }

</bundles_post_ra>
